<compile_context>
chip_gen: v5e
topology: v5e:2x2
jax: 0.10.0
libtpu: 0.0.40
codegen_flags: <defaults>
</compile_context>

<pallas_src>
import functools

import jax
import jax.numpy as jnp
from jax.experimental import pallas as pl
from jax.experimental.pallas import tpu as pltpu

_EPS = 1e-5  # BatchNorm eps (PyTorch default)
_VMEM_LIMIT = 32 * 1024 * 1024  # safe on v5e/v6e (128 MiB) and v7x (64 MiB)

_MM_CPARAMS = pltpu.CompilerParams(
    dimension_semantics=("parallel", "parallel"),
    vmem_limit_bytes=_VMEM_LIMIT,
)
_POOL_CPARAMS = pltpu.CompilerParams(
    dimension_semantics=("parallel",),
    vmem_limit_bytes=_VMEM_LIMIT,
)


def _round_up(x, m):
    return ((x + m - 1) // m) * m


# --------------------------------------------------------------------------
# Pallas kernels
# --------------------------------------------------------------------------
def _mm_bn_kernel(p_ref, w_ref, sb_ref, o_ref, *, relu):
    # bf16 [TM, K] @ bf16 [K, TN] -> f32 acc, folded BN (scale/bias), ReLU,
    # stored as bf16.
    acc = jnp.dot(p_ref[...], w_ref[...], preferred_element_type=jnp.float32)
    sb = sb_ref[...]                      # (2, TN) f32: row 0 scale, row 1 bias
    acc = acc * sb[0:1, :] + sb[1:2, :]
    if relu:
        acc = jnp.maximum(acc, 0.0)
    o_ref[...] = acc.astype(o_ref.dtype)


def _mm_bn_res_kernel(p_ref, w_ref, sb_ref, r_ref, o_ref, *, relu):
    # Same as above but fuses the (bf16) residual add before the ReLU.
    acc = jnp.dot(p_ref[...], w_ref[...], preferred_element_type=jnp.float32)
    sb = sb_ref[...]
    acc = acc * sb[0:1, :] + sb[1:2, :] + r_ref[...].astype(jnp.float32)
    if relu:
        acc = jnp.maximum(acc, 0.0)
    o_ref[...] = acc.astype(o_ref.dtype)


def _max3_kernel(t_ref, o_ref):
    # t_ref: [3, TM, C] bf16 H-direction taps -> elementwise max of the 3 taps.
    o_ref[...] = jnp.maximum(jnp.maximum(t_ref[0], t_ref[1]), t_ref[2])


# --------------------------------------------------------------------------
# Pallas wrappers
# --------------------------------------------------------------------------
def _pad_rows(a, mp, value=0.0):
    m = a.shape[0]
    if mp == m:
        return a
    pads = ((0, mp - m),) + ((0, 0),) * (a.ndim - 1)
    return jnp.pad(a, pads, constant_values=value)


def _pick_tm(m, k):
    # Bigger tiles on the memory-bound small-K layers; modest tiles when the
    # K-slab (and weight block) is large.  Always a multiple of 8.
    cap = 512 if k <= 1536 else 256
    return min(cap, _round_up(m, 8))


def matmul_bn_act(patches, wmat, scale_bias, residual=None, relu=True):
    """Fused (im2col-patches @ weights) * scale + bias (+ residual) (+ ReLU)."""
    M, K = patches.shape
    Cout = wmat.shape[1]
    TM = _pick_tm(M, K)
    TN = Cout if Cout <= 256 else 256
    Mp = _round_up(M, TM)
    p = _pad_rows(patches, Mp)
    # Grid: Cout tiles outer, M tiles inner -> the weight / scale-bias block
    # index is constant over the inner sweep, so it is DMA'd once per Cout tile.
    grid = (Cout // TN, Mp // TM)

    if residual is None:
        kernel = functools.partial(_mm_bn_kernel, relu=relu)
        in_specs = [
            pl.BlockSpec((TM, K), lambda j, i: (i, 0)),
            pl.BlockSpec((K, TN), lambda j, i: (0, j)),
            pl.BlockSpec((2, TN), lambda j, i: (0, j)),
        ]
        args = (p, wmat, scale_bias)
    else:
        r = _pad_rows(residual.astype(jnp.bfloat16), Mp)
        kernel = functools.partial(_mm_bn_res_kernel, relu=relu)
        in_specs = [
            pl.BlockSpec((TM, K), lambda j, i: (i, 0)),
            pl.BlockSpec((K, TN), lambda j, i: (0, j)),
            pl.BlockSpec((2, TN), lambda j, i: (0, j)),
            pl.BlockSpec((TM, TN), lambda j, i: (i, j)),
        ]
        args = (p, wmat, scale_bias, r)

    out = pl.pallas_call(
        kernel,
        out_shape=jax.ShapeDtypeStruct((Mp, Cout), jnp.bfloat16),
        grid=grid,
        in_specs=in_specs,
        out_specs=pl.BlockSpec((TM, TN), lambda j, i: (i, j)),
        compiler_params=_MM_CPARAMS,
    )(*args)
    return out if Mp == M else out[:M]


def _im2col(x, kh, kw, stride, pad):
    # x: [N, H, W, C] -> ([N*OH*OW, kh*kw*C] bf16, OH, OW); patch order (kh, kw, C).
    # TODO(synk): this materializes a kh*kw-amplified patch matrix in HBM; an
    # implicit-GEMM kernel (halo DMA + in-kernel tap loop) would remove it.
    x = x.astype(jnp.bfloat16)
    N, H, W, C = x.shape
    xp = jnp.pad(x, ((0, 0), (pad, pad), (pad, pad), (0, 0)))
    OH = (H + 2 * pad - kh) // stride + 1
    OW = (W + 2 * pad - kw) // stride + 1
    cols = []
    for i in range(kh):
        for j in range(kw):
            cols.append(xp[:, i:i + stride * OH:stride, j:j + stride * OW:stride, :])
    patches = jnp.concatenate(cols, axis=-1)
    return patches.reshape(N * OH * OW, kh * kw * C), OH, OW


def conv_bn(x, cp, stride, pad, relu=True, residual=None):
    """Conv2d (pre-flattened bf16 [K, Cout] weights) + folded BN (+res) (+ReLU)."""
    N = x.shape[0]
    wmat = cp["w"]
    kh, kw = cp["kh"], cp["kw"]
    patches, OH, OW = _im2col(x, kh, kw, stride, pad)
    kdim = patches.shape[1]
    kpad = wmat.shape[0]
    if kpad != kdim:  # K padded to a multiple of 16 at init (stem: 147 -> 160)
        patches = jnp.pad(patches, ((0, 0), (0, kpad - kdim)))
    cout = wmat.shape[1]
    res = residual.reshape(N * OH * OW, cout) if residual is not None else None
    out = matmul_bn_act(patches, wmat, cp["sb"], residual=res, relu=relu)
    return out.reshape(N, OH, OW, cout)


def maxpool_3x3_s2_p1(x):
    """nn.MaxPool2d(kernel_size=3, stride=2, padding=1) in NHWC (bf16)."""
    N, H, W, C = x.shape
    x = x.astype(jnp.bfloat16)
    xp = jnp.pad(x, ((0, 0), (1, 1), (1, 1), (0, 0)), constant_values=-jnp.inf)
    OH = (H + 2 - 3) // 2 + 1
    OW = (W + 2 - 3) // 2 + 1
    # W-direction 3-tap max with stride 2 (fused elementwise in XLA).
    colmax = jnp.maximum(
        jnp.maximum(xp[:, :, 0:2 * OW:2, :], xp[:, :, 1:1 + 2 * OW:2, :]),
        xp[:, :, 2:2 + 2 * OW:2, :])                      # [N, H+2, OW, C]
    # H-direction taps (stride 2) -> (3, M, C) stack reduced in Pallas.
    taps = jnp.stack([colmax[:, i:i + 2 * OH:2, :, :] for i in range(3)], axis=0)
    M = N * OH * OW
    taps = taps.reshape(3, M, C)
    TM = min(512, _round_up(M, 8))
    Mp = _round_up(M, TM)
    if Mp != M:
        taps = jnp.pad(taps, ((0, 0), (0, Mp - M), (0, 0)))
    out = pl.pallas_call(
        _max3_kernel,
        out_shape=jax.ShapeDtypeStruct((Mp, C), jnp.bfloat16),
        grid=(Mp // TM,),
        in_specs=[pl.BlockSpec((3, TM, C), lambda i: (0, i, 0))],
        out_specs=pl.BlockSpec((TM, C), lambda i: (i, 0)),
        compiler_params=_POOL_CPARAMS,
    )(taps)
    out = out if Mp == M else out[:M]
    return out.reshape(N, OH, OW, C)


# --------------------------------------------------------------------------
# Deterministic synthetic parameters (resnet18 shapes; not a checkpoint load)
# --------------------------------------------------------------------------
def _init_conv(key, cout, cin, kh, kw):
    fan_in = cin * kh * kw
    return (jax.random.normal(key, (cout, cin, kh, kw), jnp.float32)
            / jnp.sqrt(jnp.float32(fan_in)))


def _init_bn_folded(key, c):
    k1, k2, k3, k4 = jax.random.split(key, 4)
    gamma = 1.0 + 0.1 * jax.random.normal(k1, (c,), jnp.float32)
    beta = 0.1 * jax.random.normal(k2, (c,), jnp.float32)
    mean = 0.1 * jax.random.normal(k3, (c,), jnp.float32)
    var = jnp.abs(jax.random.normal(k4, (c,), jnp.float32)) + 0.5
    scale = gamma / jnp.sqrt(var + _EPS)
    bias = beta - mean * scale
    return scale, bias


def _prep_convbn(w_oihw, scale, bias):
    # Pre-transpose/reshape to [KH*KW*Cin, Cout], pad K to a multiple of 16
    # (bf16 sublane pair), cast bf16 once; merge scale/bias into one (2, Cout).
    cout, cin, kh, kw = w_oihw.shape
    wmat = jnp.transpose(w_oihw, (2, 3, 1, 0)).reshape(kh * kw * cin, cout)
    kdim = wmat.shape[0]
    kpad = _round_up(kdim, 16)
    if kpad != kdim:
        wmat = jnp.pad(wmat, ((0, kpad - kdim), (0, 0)))
    return {
        "w": wmat.astype(jnp.bfloat16),
        "sb": jnp.stack([scale, bias]).astype(jnp.float32),  # (2, Cout)
        "kh": kh,
        "kw": kw,
    }


def _init_convbn(key, cout, cin, kh, kw):
    kconv, kbn = jax.random.split(key)
    w = _init_conv(kconv, cout, cin, kh, kw)
    scale, bias = _init_bn_folded(kbn, cout)
    return _prep_convbn(w, scale, bias)


def _init_basic_block(key, inplanes, planes, stride):
    keys = jax.random.split(key, 3)
    p = {
        "conv1": _init_convbn(keys[0], planes, inplanes, 3, 3),
        "conv2": _init_convbn(keys[1], planes, planes, 3, 3),
        "stride": stride,
    }
    if stride != 1 or inplanes != planes:
        p["downsample"] = _init_convbn(keys[2], planes, inplanes, 1, 1)
    return p


def init_resnet18_params(key):
    keys = jax.random.split(key, 6)
    params = {"stem": _init_convbn(keys[0], 64, 3, 7, 7)}
    cfg = [("layer1", 64, 64, 1), ("layer2", 64, 128, 2),
           ("layer3", 128, 256, 2), ("layer4", 256, 512, 2)]
    for idx, (name, inp, outp, stride) in enumerate(cfg):
        k1, k2 = jax.random.split(keys[2 + idx], 2)
        params[name] = [_init_basic_block(k1, inp, outp, stride),
                        _init_basic_block(k2, outp, outp, 1)]
    return params


# --------------------------------------------------------------------------
# ResNet-18 backbone forward (matches the PyTorch module's forward exactly)
# --------------------------------------------------------------------------
def basic_block(x, p):
    stride = p["stride"]
    out = conv_bn(x, p["conv1"], stride=stride, pad=1, relu=True)
    if "downsample" in p:
        identity = conv_bn(x, p["downsample"], stride=stride, pad=0, relu=False)
    else:
        identity = x
    # out = relu(bn2(conv2(out)) + identity)
    out = conv_bn(out, p["conv2"], stride=1, pad=1, relu=True, residual=identity)
    return out


def resnet18_forward(inp_nchw, params):
    # NCHW -> NHWC, bf16 internal compute (f32 accumulation inside the kernels).
    x = jnp.transpose(inp_nchw, (0, 2, 3, 1)).astype(jnp.bfloat16)
    # features = conv1 (7x7, s2, p3) + bn1 + relu
    x = conv_bn(x, params["stem"], stride=2, pad=3, relu=True)
    lmx = maxpool_3x3_s2_p1(x)
    l1 = lmx
    for p in params["layer1"]:
        l1 = basic_block(l1, p)
    l2 = l1
    for p in params["layer2"]:
        l2 = basic_block(l2, p)
    l3 = l2
    for p in params["layer3"]:
        l3 = basic_block(l3, p)
    l4 = l3
    for p in params["layer4"]:
        l4 = basic_block(l4, p)
    # TODO(synk): module defines self.avgpool but its forward never uses it; omitted.
    to_nchw = lambda t: jnp.transpose(t, (0, 3, 1, 2)).astype(jnp.float32)
    return tuple(to_nchw(t) for t in (x, l1, l2, l3, l4))


if __name__ == "__main__":
    key = jax.random.PRNGKey(0)
    pkey, xkey = jax.random.split(key)
    params = init_resnet18_params(pkey)
    # Small-but-consistent shapes: ResNet-18 conv1 needs 3 input channels.
    inp = jax.random.normal(xkey, (2, 3, 64, 64), jnp.float32)

    outs = resnet18_forward(inp, params)
    outs = jax.block_until_ready(outs)

    expected = [(2, 64, 32, 32), (2, 64, 16, 16), (2, 128, 8, 8),
                (2, 256, 4, 4), (2, 512, 2, 2)]
    got = [tuple(map(int, o.shape)) for o in outs]
    assert got == expected, f"shape mismatch: {got} vs {expected}"
    assert all(bool(jnp.all(jnp.isfinite(o))) for o in outs), "non-finite output"
    print("KERNEL_OK")
</pallas_src>

<mosaic_0001>
module attributes {stable_mosaic.version = 11 : i64} {
  func.func @_mm_bn_kernel(%arg0: i32, %arg1: i32, %arg2: memref<512x160xbf16, #tpu.memory_space<vmem>>, %arg3: memref<160x64xbf16, #tpu.memory_space<vmem>>, %arg4: memref<2x64xf32, #tpu.memory_space<vmem>>, %arg5: memref<512x64xbf16, #tpu.memory_space<vmem>>) attributes {dimension_semantics = [#tpu.dimension_semantics<parallel>, #tpu.dimension_semantics<parallel>], iteration_bounds = array<i64: 1, 4>, scalar_prefetch = 0 : i64, scratch_operands = 0 : i64, tpu.core_type = #tpu.core_type<tc>, window_params = [{transform_indices = @transform_0, window_bounds = array<i64: 512, 160>}, {transform_indices = @transform_1, window_bounds = array<i64: 160, 64>}, {transform_indices = @transform_2, window_bounds = array<i64: 2, 64>}, {transform_indices = @transform_3, window_bounds = array<i64: 512, 64>}]} {
    %c0 = arith.constant 0 : index
    %c0_0 = arith.constant 0 : index
    %0 = vector.load %arg2[%c0, %c0_0] : memref<512x160xbf16, #tpu.memory_space<vmem>>, vector<512x160xbf16>
    %c0_1 = arith.constant 0 : index
    %c0_2 = arith.constant 0 : index
    %1 = vector.load %arg3[%c0_1, %c0_2] : memref<160x64xbf16, #tpu.memory_space<vmem>>, vector<160x64xbf16>
    %cst = arith.constant dense<0.000000e+00> : vector<512x64xf32>
    %2 = tpu.matmul %0, %1, %cst {dimension_numbers = #tpu.dot_dimension_numbers<[1], [0], [0], [1], [0, 0, 1, 1], [], []>} : vector<512x160xbf16>, vector<160x64xbf16>, vector<512x64xf32> -> vector<512x64xf32>
    %c0_3 = arith.constant 0 : index
    %c0_4 = arith.constant 0 : index
    %3 = vector.load %arg4[%c0_3, %c0_4] : memref<2x64xf32, #tpu.memory_space<vmem>>, vector<2x64xf32>
    %4 = vector.extract_strided_slice %3 {offsets = [0, 0], sizes = [1, 64], strides = [1, 1]} : vector<2x64xf32> to vector<1x64xf32>
    %5 = vector.broadcast %4 : vector<1x64xf32> to vector<512x64xf32>
    %6 = arith.mulf %2, %5 : vector<512x64xf32>
    %7 = vector.extract_strided_slice %3 {offsets = [1, 0], sizes = [1, 64], strides = [1, 1]} : vector<2x64xf32> to vector<1x64xf32>
    %8 = vector.broadcast %7 : vector<1x64xf32> to vector<512x64xf32>
    %9 = arith.addf %6, %8 : vector<512x64xf32>
    %cst_5 = arith.constant 0.000000e+00 : f32
    %10 = vector.broadcast %cst_5 : f32 to vector<512x64xf32>
    %11 = arith.maximumf %9, %10 : vector<512x64xf32>
    %12 = arith.truncf %11 : vector<512x64xf32> to vector<512x64xbf16>
    %c0_6 = arith.constant 0 : index
    %c0_7 = arith.constant 0 : index
    %13 = vector.load %arg5[%c0_6, %c0_7] : memref<512x64xbf16, #tpu.memory_space<vmem>>, vector<512x64xbf16>
    tpu.vector_store %arg5[%c0_6, %c0_7], %12 {strides = array<i32>} : memref<512x64xbf16, #tpu.memory_space<vmem>>, vector<512x64xbf16>,
    return
  }
  func.func @transform_0(%arg0: i32, %arg1: i32) -> (i32, i32) {
    %c0_i32 = arith.constant 0 : i32
    %c0_i32_0 = arith.constant 0 : i32
    return %arg1, %c0_i32 : i32, i32
  }
  func.func @transform_1(%arg0: i32, %arg1: i32) -> (i32, i32) {
    %c0_i32 = arith.constant 0 : i32
    %c0_i32_0 = arith.constant 0 : i32
    return %c0_i32, %arg0 : i32, i32
  }
  func.func @transform_2(%arg0: i32, %arg1: i32) -> (i32, i32) {
    %c0_i32 = arith.constant 0 : i32
    %c0_i32_0 = arith.constant 0 : i32
    return %c0_i32, %arg0 : i32, i32
  }
  func.func @transform_3(%arg0: i32, %arg1: i32) -> (i32, i32) {
    %c0_i32 = arith.constant 0 : i32
    return %arg1, %arg0 : i32, i32
  }
}

</mosaic_0001>

<bundles_post_ra>
// kernel: tpu_custom_call.1
= control target key start
LH: loop header
LB: loop body
LE: loop exit
PB: predicated region body
PF: predicated region fallthrough
CT: control target
= control target key end

     0   :  { %s2023_s12 = smov 0   ;;  %s2025_s13 = smov 0   ;;  %s2595_s0 = inlined_call_operand.vmem [shape: bf16[2048,160], index: 0, kind: input, shape index: {}]   ;;  %s2596_s1 = inlined_call_operand.vmem [shape: bf16[160,64], index: 1, kind: input, shape index: {}]   ;;  %s2597_s2 = inlined_call_operand.vmem [shape: f32[2,64], index: 2, kind: input, shape index: {}]   ;;  %s2598_s3 = inlined_call_operand.vmem [shape: bf16[2048,64], index: 3, kind: output, shape index: {}]  }
   0x1   :  { %s2027_s14 = smov 0  }
   0x2 LB: > { %s22_s15 = sadd.s32 1, %s1997_s13  ;;  %p1534_p0 = scmp.ge.s32.totalorder %s2001_s14, 1  ;;  %s2001_s14 = sphi %s2027_s14, %s13_s14   ;;  %s1997_s13 = sphi %s2025_s13, %s2600_s13   ;;  %s1993_s12 = sphi %s2023_s12, %s2599_s12  }
   0x3   : > { %p23_p1 = scmp.ge.s32.totalorder %s22_s15, 4  ;;  %p171_p2 = scmp.lt.s32.totalorder %s2001_s14, 5 }
   0x5   : > { %s2602_s15 = smov (%p23_p1, %s22_s15), 0  ;;  %p172_p3 = pnand %p1534_p0, %p171_p2 }
   0x6   : > { %s1535_s20 = sshll.u32 (!%p172_p3), %s1993_s12, 6 }
   0x7   : > { %175 = sbr.rel (%p172_p3) target bundleno = 436 (0x1b4), region = 32  ;;  %p208_p4 = scmp.lt.s32.totalorder (!%p172_p3), %s1535_s20, 255 }
   0xc   : > { %v1942_v0 = vld [vmem:[%s2596_s1 + $0x38] sm:$0xff]  ;;  %v1944_v1 = vld [vmem:[%s2596_s1 + $0x48] sm:$0xff]  ;;  %v1941_v2 = vld [vmem:[%s2596_s1 + $0x30] sm:$0xff]  ;;  %s2604_s20 = smov (!%p208_p4, %s1535_s20), 255  ;;  %vm664_vm0 = vcmask 261120   ;;  %vm1358_vm1 = vcmask 519168  }
   0xd   : > { %761 = vmatpush.bf16.msra.mxu0 %v1942_v0  ;;  %1945 = vmatpush.bf16.msra.mxu2 %v1942_v0  ;;  %v1943_v3 = vld [vmem:[%s2596_s1 + $0x40] sm:$0xff]  ;;  %s1870_s25 = sshll.u32 %s2604_s20, 3  ;;  %v1940_v4 = vld [vmem:[%s2596_s1 + $0x28] sm:$0xff]  ;;  %v1938_v12 = vld [vmem:[%s2596_s1 + $0x18] sm:$0xff]  ;;  %s1539_s19 = sshll.u32 %s2604_s20, 2 }
   0xe   : > { %936 = vmatpush.bf16.msra.mxu1 %v1944_v1  ;;  %1953 = vmatpush.bf16.msra.mxu3 %v1944_v1  ;;  %s2059_s28 = scalar_lea.vmem %s2595_s0, %s1870_s25  ;;  %v1939_v8 = vld [vmem:[%s2596_s1 + $0x20] sm:$0xff]  ;;  %v1937_v13 = vld [vmem:[%s2596_s1 + $0x10] sm:$0xff]  ;;  %v1936_v17 = vld [vmem:[%s2596_s1 + $0x8] sm:$0xff]  ;;  %s2198_s23 = scalar_lea.vmem %s2598_s3, %s1539_s19 }
   0xf   : > { %v1871_v5 = vld [vmem:[%s2059_s28 + $0x4] sm:$0xf]  ;;  %v1544_v6 = vld [vmem:[%s2059_s28 + $0x8] sm:$0xf0]  ;;  %v1905_v9 = vld [vmem:[%s2059_s28 + $0x114] sm:$0xf] }
  0x10   : > { %v1547_v7 = vor.u32 %v1871_v5, %v1544_v6  ;;  %v1680_v10 = vld [vmem:[%s2059_s28 + $0x118] sm:$0xf0]  ;;  %v1873_v14 = vld [vmem:[%s2059_s28 + $0x14] sm:$0xf]  ;;  %v1907_v18 = vld [vmem:[%s2059_s28 + $0x124] sm:$0xf] }
  0x11   : > { %762 = vmatpush.bf16.msra.mxu0 %v1941_v2  ;;  %1946 = vmatpush.bf16.msra.mxu2 %v1941_v2  ;;  %v1683_v11 = vor.u32 %v1905_v9, %v1680_v10  ;;  %v1552_v15 = vld [vmem:[%s2059_s28 + $0x18] sm:$0xf0]  ;;  %v1688_v19 = vld [vmem:[%s2059_s28 + $0x128] sm:$0xf0]  ;;  %v1935_v21 = vld [vmem:[%s2596_s1] sm:$0xff] }
  0x12   : > { %937 = vmatpush.bf16.msra.mxu1 %v1943_v3  ;;  %1954 = vmatpush.bf16.msra.mxu3 %v1943_v3  ;;  %v1555_v16 = vor.u32 %v1873_v14, %v1552_v15  ;;  %v1691_v20 = vor.u32 %v1907_v18, %v1688_v19  ;;  %v1542_v22 = vld [vmem:[%s2059_s28] sm:$0xf]  ;;  %v1872_v23 = vld [vmem:[%s2059_s28 + $0x4] sm:$0xf0]  ;;  %v1875_v28 = vld [vmem:[%s2059_s28 + $0x24] sm:$0xf] }
  0x13   : > { %v1670_v24 = vld [vmem:[%s2059_s28 + $0x100] sm:$0xf]  ;;  %v1904_v25 = vld [vmem:[%s2059_s28 + $0x104] sm:$0xf0]  ;;  %v1543_v26 = vor.u32 %v1872_v23, %v1542_v22  ;;  %v1560_v29 = vld [vmem:[%s2059_s28 + $0x28] sm:$0xf0] }
  0x14   : > { %v1671_v27 = vor.u32 %v1904_v25, %v1670_v24  ;;  %v1563_v30 = vor.u32 %v1875_v28, %v1560_v29  ;;  %v1909_v31 = vld [vmem:[%s2059_s28 + $0x134] sm:$0xf]  ;;  %v1696_v32 = vld [vmem:[%s2059_s28 + $0x138] sm:$0xf0]  ;;  %v1550_v34 = vld [vmem:[%s2059_s28 + $0x10] sm:$0xf] }
  0x15   : > { %1836 = vmatmul.msk.bf16.vlgmr.msra.gmra.mxu1 %vm664_vm0, %v1547_v7  ;;  %763 = vmatpush.bf16.msra.mxu0 %v1940_v4  ;;  %v1699_v33 = vor.u32 %v1909_v31, %v1696_v32  ;;  %v1874_v35 = vld [vmem:[%s2059_s28 + $0x14] sm:$0xf0]  ;;  %v1678_v36 = vld [vmem:[%s2059_s28 + $0x110] sm:$0xf]  ;;  %v1877_v40 = vld [vmem:[%s2059_s28 + $0x34] sm:$0xf] }
  0x16   : > { %1947 = vmatpush.bf16.msra.mxu2 %v1940_v4  ;;  %1853 = vmatmul.msk.bf16.vlgmr.msra.gmra.mxu3 %vm664_vm0, %v1683_v11  ;;  %v1906_v37 = vld [vmem:[%s2059_s28 + $0x114] sm:$0xf0]  ;;  %v1551_v38 = vor.u32 %v1874_v35, %v1550_v34  ;;  %v1568_v41 = vld [vmem:[%s2059_s28 + $0x38] sm:$0xf0]  ;;  %v1911_v43 = vld [vmem:[%s2059_s28 + $0x144] sm:$0xf] }
  0x17   : > { %v1679_v39 = vor.u32 %v1906_v37, %v1678_v36  ;;  %v1571_v42 = vor.u32 %v1877_v40, %v1568_v41  ;;  %v1704_v44 = vld [vmem:[%s2059_s28 + $0x148] sm:$0xf0]  ;;  %v1558_v46 = vld [vmem:[%s2059_s28 + $0x20] sm:$0xf]  ;;  %v1876_v47 = vld [vmem:[%s2059_s28 + $0x24] sm:$0xf0] }
  0x18   : > { %v1707_v45 = vor.u32 %v1911_v43, %v1704_v44  ;;  %v1686_v48 = vld [vmem:[%s2059_s28 + $0x120] sm:$0xf]  ;;  %v1908_v49 = vld [vmem:[%s2059_s28 + $0x124] sm:$0xf0]  ;;  %v1559_v50 = vor.u32 %v1876_v47, %v1558_v46  ;;  %v1879_v52 = vld [vmem:[%s2059_s28 + $0x44] sm:$0xf] }
  0x19   : > { %764 = vmatpush.bf16.msra.mxu0 %v1939_v8  ;;  %v1687_v51 = vor.u32 %v1908_v49, %v1686_v48  ;;  %v1576_v53 = vld [vmem:[%s2059_s28 + $0x48] sm:$0xf0]  ;;  %v1913_v55 = vld [vmem:[%s2059_s28 + $0x154] sm:$0xf]  ;;  %v1712_v56 = vld [vmem:[%s2059_s28 + $0x158] sm:$0xf0] }
  0x1a   : > { %1948 = vmatpush.bf16.msra.mxu2 %v1939_v8  ;;  %v1579_v54 = vor.u32 %v1879_v52, %v1576_v53  ;;  %v1715_v57 = vor.u32 %v1913_v55, %v1712_v56  ;;  %v1566_v58 = vld [vmem:[%s2059_s28 + $0x30] sm:$0xf]  ;;  %v1878_v59 = vld [vmem:[%s2059_s28 + $0x34] sm:$0xf0]  ;;  %v1881_v0 = vld [vmem:[%s2059_s28 + $0x54] sm:$0xf] }
  0x1b   : > { %v1694_v60 = vld [vmem:[%s2059_s28 + $0x130] sm:$0xf]  ;;  %v1910_v61 = vld [vmem:[%s2059_s28 + $0x134] sm:$0xf0]  ;;  %v1567_v62 = vor.u32 %v1878_v59, %v1566_v58  ;;  %v1584_v1 = vld [vmem:[%s2059_s28 + $0x58] sm:$0xf0] }
  0x1c   : > { %v1695_v63 = vor.u32 %v1910_v61, %v1694_v60  ;;  %v1587_v2 = vor.u32 %v1881_v0, %v1584_v1  ;;  %v1915_v3 = vld [vmem:[%s2059_s28 + $0x164] sm:$0xf]  ;;  %v1720_v4 = vld [vmem:[%s2059_s28 + $0x168] sm:$0xf0]  ;;  %v1574_v6 = vld [vmem:[%s2059_s28 + $0x40] sm:$0xf] }
  0x1d   : > { %765 = vmatpush.bf16.msra.mxu0 %v1938_v12  ;;  %v1723_v5 = vor.u32 %v1915_v3, %v1720_v4  ;;  %v1880_v7 = vld [vmem:[%s2059_s28 + $0x44] sm:$0xf0]  ;;  %v1702_v8 = vld [vmem:[%s2059_s28 + $0x140] sm:$0xf]  ;;  %v1917_v15 = vld [vmem:[%s2059_s28 + $0x174] sm:$0xf] }
  0x1e   : > { %1949 = vmatpush.bf16.msra.mxu2 %v1938_v12  ;;  %v1912_v9 = vld [vmem:[%s2059_s28 + $0x144] sm:$0xf0]  ;;  %v1575_v10 = vor.u32 %v1880_v7, %v1574_v6  ;;  %v1883_v12 = vld [vmem:[%s2059_s28 + $0x64] sm:$0xf]  ;;  %v1582_v18 = vld [vmem:[%s2059_s28 + $0x50] sm:$0xf] }
  0x1f   : > { %v1703_v11 = vor.u32 %v1912_v9, %v1702_v8  ;;  %v1882_v19 = vld [vmem:[%s2059_s28 + $0x54] sm:$0xf0]  ;;  %v1885_v24 = vld [vmem:[%s2059_s28 + $0x74] sm:$0xf]  ;;  %v1600_v25 = vld [vmem:[%s2059_s28 + $0x78] sm:$0xf0] }
  0x20   : > { %v1583_v22 = vor.u32 %v1882_v19, %v1582_v18  ;;  %v1736_v28 = vld [vmem:[%s2059_s28 + $0x188] sm:$0xf0]  ;;  %v1884_v31 = vld [vmem:[%s2059_s28 + $0x64] sm:$0xf0]  ;;  %v1718_v32 = vld [vmem:[%s2059_s28 + $0x160] sm:$0xf] }
  0x21   : > { %766 = vmatpush.bf16.msra.mxu0 %v1937_v13  ;;  %v1887_v36 = vld [vmem:[%s2059_s28 + $0x84] sm:$0xf]  ;;  %v1608_v37 = vld [vmem:[%s2059_s28 + $0x88] sm:$0xf0]  ;;  %v1921_v40 = vld [vmem:[%s2059_s28 + $0x194] sm:$0xf] }
  0x22   : > { %1950 = vmatpush.bf16.msra.mxu2 %v1937_v13  ;;  %v1592_v13 = vld [vmem:[%s2059_s28 + $0x68] sm:$0xf0]  ;;  %v1744_v41 = vld [vmem:[%s2059_s28 + $0x198] sm:$0xf0]  ;;  %v1598_v43 = vld [vmem:[%s2059_s28 + $0x70] sm:$0xf] }
  0x23   : > { %v1595_v14 = vor.u32 %v1883_v12, %v1592_v13  ;;  %v1886_v44 = vld [vmem:[%s2059_s28 + $0x74] sm:$0xf0]  ;;  %v1616_v52 = vld [vmem:[%s2059_s28 + $0x98] sm:$0xf0]  ;;  %v1923_v55 = vld [vmem:[%s2059_s28 + $0x1a4] sm:$0xf] }
  0x24   : > { %v1918_v46 = vld [vmem:[%s2059_s28 + $0x174] sm:$0xf0]  ;;  %v1599_v47 = vor.u32 %v1886_v44, %v1598_v43  ;;  %v1752_v56 = vld [vmem:[%s2059_s28 + $0x1a8] sm:$0xf0]  ;;  %v1099_v59 = vld [vmem:[%s2597_s2] sm:$0x3] }
  0x25   : > { %1837 = vmatmul.msk.bf16.gmra.mxu1 %vm664_vm0, %v1555_v16  ;;  %767 = vmatpush.bf16.msra.mxu0 %v1936_v17  ;;  %v1728_v16 = vld [vmem:[%s2059_s28 + $0x178] sm:$0xf0]  ;;  %v1755_v58 = vor.u32 %v1923_v55, %v1752_v56  ;;  %v1606_v60 = vld [vmem:[%s2059_s28 + $0x80] sm:$0xf]  ;;  %v1888_v61 = vld [vmem:[%s2059_s28 + $0x84] sm:$0xf0] }
  0x26   : > { %1951 = vmatpush.bf16.msra.mxu2 %v1936_v17  ;;  %1854 = vmatmul.msk.bf16.gmra.mxu3 %vm664_vm0, %v1691_v20  ;;  %v1731_v17 = vor.u32 %v1917_v15, %v1728_v16  ;;  %v1710_v20 = vld [vmem:[%s2059_s28 + $0x150] sm:$0xf]  ;;  %v2181_v0 = vperm.slane %v1099_v59, 0  ;;  %v1607_v1 = vor.u32 %v1888_v61, %v1606_v60  ;;  %v1925_v19 = vld [vmem:[%s2059_s28 + $0x1b4] sm:$0xf] }
  0x27   : > { %v1750_v61 = vld [vmem:[%s2059_s28 + $0x1a0] sm:$0xf] }
  0x29   : > { %768 = vmatpush.bf16.msra.mxu0 %v1935_v21 }
  0x2a   : > { %1952 = vmatpush.bf16.msra.mxu2 %v1935_v21  ;;  %v1914_v21 = vld [vmem:[%s2059_s28 + $0x154] sm:$0xf0] }
  0x2b   : > { %v1711_v23 = vor.u32 %v1914_v21, %v1710_v20  ;;  %v1760_v20 = vld [vmem:[%s2059_s28 + $0x1b8] sm:$0xf0] }
  0x2c   : > { %769 = vmatmul.bf16.vlgmr.msra.gmra.mxu0 %v1543_v26  ;;  %v1603_v26 = vor.u32 %v1885_v24, %v1600_v25  ;;  %v1614_v24 = vld [vmem:[%s2059_s28 + $0x90] sm:$0xf]  ;;  %v1890_v25 = vld [vmem:[%s2059_s28 + $0x94] sm:$0xf0] }
  0x2d   : > { %849 = vmatmul.bf16.vlgmr.msra.gmra.mxu2 %v1671_v27  ;;  %v1919_v27 = vld [vmem:[%s2059_s28 + $0x184] sm:$0xf] }
  0x2e   : > { %v1739_v29 = vor.u32 %v1919_v27, %v1736_v28  ;;  %v1742_v27 = vld [vmem:[%s2059_s28 + $0x190] sm:$0xf]  ;;  %v1922_v28 = vld [vmem:[%s2059_s28 + $0x194] sm:$0xf0] }
  0x35   : > { %1838 = vmatmul.msk.bf16.gmra.mxu1 %vm664_vm0, %v1563_v30  ;;  %v1590_v30 = vld [vmem:[%s2059_s28 + $0x60] sm:$0xf] }
  0x36   : > { %1855 = vmatmul.msk.bf16.gmra.mxu3 %vm664_vm0, %v1699_v33  ;;  %v1916_v33 = vld [vmem:[%s2059_s28 + $0x164] sm:$0xf0]  ;;  %v1591_v34 = vor.u32 %v1884_v31, %v1590_v30  ;;  %v1615_v31 = vor.u32 %v1890_v25, %v1614_v24 }
  0x37   : > { %v1719_v35 = vor.u32 %v1916_v33, %v1718_v32  ;;  %v1743_v33 = vor.u32 %v1922_v28, %v1742_v27 }
  0x3c   : > { %774 = vmatmul.bf16.gmra.mxu0 %v1551_v38  ;;  %v1611_v38 = vor.u32 %v1887_v36, %v1608_v37 }
  0x3d   : > { %854 = vmatmul.bf16.gmra.mxu2 %v1679_v39 }
  0x45   : > { %1839 = vmatmul.msk.bf16.gmra.mxu1 %vm664_vm0, %v1571_v42  ;;  %v1747_v42 = vor.u32 %v1921_v40, %v1744_v41  ;;  %v1893_v40 = vld [vmem:[%s2059_s28 + $0xb4] sm:$0xf]  ;;  %v1632_v41 = vld [vmem:[%s2059_s28 + $0xb8] sm:$0xf0] }
  0x46   : > { %1856 = vmatmul.msk.bf16.gmra.mxu3 %vm664_vm0, %v1707_v45  ;;  %v1726_v45 = vld [vmem:[%s2059_s28 + $0x170] sm:$0xf] }
  0x47   : > { %v1727_v48 = vor.u32 %v1918_v46, %v1726_v45  ;;  %v1635_v46 = vor.u32 %v1893_v40, %v1632_v41  ;;  %v1894_v40 = vld [vmem:[%s2059_s28 + $0xb4] sm:$0xf0] }
  0x4c   : > { %779 = vmatmul.bf16.gmra.mxu0 %v1559_v50 }
  0x4d   : > { %859 = vmatmul.bf16.gmra.mxu2 %v1687_v51  ;;  %v1889_v51 = vld [vmem:[%s2059_s28 + $0x94] sm:$0xf] }
  0x4e   : > { %v1619_v53 = vor.u32 %v1889_v51, %v1616_v52  ;;  %v1927_v51 = vld [vmem:[%s2059_s28 + $0x1c4] sm:$0xf]  ;;  %v1768_v52 = vld [vmem:[%s2059_s28 + $0x1c8] sm:$0xf0] }
  0x55   : > { %1840 = vmatmul.msk.bf16.gmra.mxu1 %vm664_vm0, %v1579_v54 }
  0x56   : > { %1857 = vmatmul.msk.bf16.gmra.mxu3 %vm664_vm0, %v1715_v57 }
  0x5c   : > { %784 = vmatmul.bf16.gmra.mxu0 %v1567_v62  ;;  %v1734_v62 = vld [vmem:[%s2059_s28 + $0x180] sm:$0xf] }
  0x5d   : > { %864 = vmatmul.bf16.gmra.mxu2 %v1695_v63  ;;  %v1920_v63 = vld [vmem:[%s2059_s28 + $0x184] sm:$0xf0] }
  0x5e   : > { %v1735_v3 = vor.u32 %v1920_v63, %v1734_v62  ;;  %v1924_v62 = vld [vmem:[%s2059_s28 + $0x1a4] sm:$0xf0] }
  0x65   : > { %1841 = vmatmul.msk.bf16.gmra.mxu1 %vm664_vm0, %v1587_v2 }
  0x66   : > { %1858 = vmatmul.msk.bf16.gmra.mxu3 %vm664_vm0, %v1723_v5  ;;  %v2184_v5 = vperm.slane %v1099_v59, 1  ;;  %v1892_v59 = vld [vmem:[%s2059_s28 + $0xa4] sm:$0xf0] }
  0x6c   : > { %789 = vmatmul.bf16.gmra.mxu0 %v1575_v10  ;;  %v1891_v10 = vld [vmem:[%s2059_s28 + $0xa4] sm:$0xf] }
  0x6d   : > { %869 = vmatmul.bf16.gmra.mxu2 %v1703_v11  ;;  %v1624_v11 = vld [vmem:[%s2059_s28 + $0xa8] sm:$0xf0] }
  0x6e   : > { %v1627_v15 = vor.u32 %v1891_v10, %v1624_v11 }
  0x75   : > { %1842 = vmatmul.msk.bf16.gmra.mxu1 %vm664_vm0, %v1595_v14 }
  0x76   : > { %1859 = vmatmul.msk.bf16.gmra.mxu3 %vm664_vm0, %v1731_v17 }
  0x7c   : > { %794 = vmatmul.bf16.gmra.mxu0 %v1583_v22 }
  0x7d   : > { %874 = vmatmul.bf16.gmra.mxu2 %v1711_v23  ;;  %v1763_v23 = vor.u32 %v1925_v19, %v1760_v20  ;;  %v1640_v19 = vld [vmem:[%s2059_s28 + $0xc8] sm:$0xf0] }
  0x85   : > { %1843 = vmatmul.msk.bf16.gmra.mxu1 %vm664_vm0, %v1603_v26 }
  0x86   : > { %1860 = vmatmul.msk.bf16.gmra.mxu3 %vm664_vm0, %v1739_v29 }
  0x8c   : > { %799 = vmatmul.bf16.gmra.mxu0 %v1591_v34 }
  0x8d   : > { %879 = vmatmul.bf16.gmra.mxu2 %v1719_v35 }
  0x92   : > { %v939_v39 = vpop.f32.mrf.mxu1 }
  0x95   : > { %1844 = vmatmul.msk.bf16.gmra.mxu1 %vm664_vm0, %v1611_v38 }
  0x96   : > { %1861 = vmatmul.msk.bf16.gmra.mxu3 %vm664_vm0, %v1747_v42 }
  0x99   : > { %v2165_v50 = vpop.f32.mrf.mxu3 }
  0x9a   : > { %v941_v49 = vpop.f32.mrf.mxu1 }
  0x9c   : > { %804 = vmatmul.bf16.gmra.mxu0 %v1599_v47 }
  0x9d   : > { %884 = vmatmul.bf16.gmra.mxu2 %v1727_v48 }
  0xa1   : > { %v2171_v57 = vpop.f32.mrf.mxu3 }
  0xa2   : > { %v944_v54 = vpop.f32.mrf.mxu1 }
  0xa5   : > { %1845 = vmatmul.msk.bf16.gmra.mxu1 %vm664_vm0, %v1619_v53 }
  0xa6   : > { %1862 = vmatmul.msk.bf16.gmra.mxu3 %vm664_vm0, %v1755_v58  ;;  %v1622_v58 = vld [vmem:[%s2059_s28 + $0xa0] sm:$0xf] }
  0xa9   : > { %v770_v2 = vpop.f32.mrf.mxu0  ;;  %v2186_v7 = vpop.f32.mrf.mxu3 }
  0xaa   : > { %v940_v4 = vadd.f32 %v939_v39, %v770_v2  ;;  %v946_v6 = vpop.f32.mrf.mxu1 }
  0xac   : > { %v1101_v8 = vmul.f32 %v2181_v0, %v940_v4  ;;  %809 = vmatmul.bf16.gmra.mxu0 %v1607_v1 }
  0xad   : > { %889 = vmatmul.bf16.gmra.mxu2 %v1735_v3  ;;  %v1623_v3 = vor.u32 %v1892_v59, %v1622_v58 }
  0xae   : > { %v1166_v9 = vadd.f32 %v2184_v5, %v1101_v8 }
  0xb0   : > { %v1230_v12 = vmax.f32 %v1166_v9, 0.0  ;;  %v2193_v13 = vpop.f32.mrf.mxu2  ;;  %v1751_v9 = vor.u32 %v1924_v62, %v1750_v61  ;;  %v1897_v61 = vld [vmem:[%s2059_s28 + $0xd4] sm:$0xf]  ;;  %v1648_v62 = vld [vmem:[%s2059_s28 + $0xd8] sm:$0xf0] }
  0xb1   : > { %v772_v14 = vpop.f32.mrf.mxu0  ;;  %v2202_v21 = vpop.f32.mrf.mxu3 }
  0xb2   : > { %v1294_v16 = vpack.c.bf16 %v1230_v12, %v1230_v12  ;;  %v942_v17 = vadd.f32 %v941_v49, %v772_v14  ;;  %v949_v18 = vpop.f32.mrf.mxu1 }
  0xb4   : > { %1359 = vst.msk [vmem:[%s2198_s23] sm:$0xf] %vm1358_vm1, %v1294_v16  ;;  %v1102_v22 = vmul.f32 %v2181_v0, %v942_v17 }
  0xb5   : > { %1846 = vmatmul.msk.bf16.gmra.mxu1 %vm664_vm0, %v1627_v15 }
  0xb6   : > { %v1167_v26 = vadd.f32 %v2184_v5, %v1102_v22  ;;  %1863 = vmatmul.msk.bf16.gmra.mxu3 %vm664_vm0, %v1763_v23 }
  0xb8   : > { %v1231_v29 = vmax.f32 %v1167_v26, 0.0  ;;  %v2213_v30 = vpop.f32.mrf.mxu2 }
  0xb9   : > { %v775_v32 = vpop.f32.mrf.mxu0  ;;  %v2216_v37 = vpop.f32.mrf.mxu3 }
  0xba   : > { %v1295_v34 = vpack.c.bf16 %v1231_v29, %v1231_v29  ;;  %v945_v35 = vadd.f32 %v944_v54, %v775_v32  ;;  %v951_v36 = vpop.f32.mrf.mxu1  ;;  %v1929_v32 = vld [vmem:[%s2059_s28 + $0x1d4] sm:$0xf] }
  0xbc   : > { %1360 = vst.msk [vmem:[%s2198_s23 + $0x4] sm:$0xf] %vm1358_vm1, %v1295_v34  ;;  %v1103_v38 = vmul.f32 %v2181_v0, %v945_v35  ;;  %814 = vmatmul.bf16.gmra.mxu0 %v1615_v31 }
  0xbd   : > { %894 = vmatmul.bf16.gmra.mxu2 %v1743_v33  ;;  %v1776_v33 = vld [vmem:[%s2059_s28 + $0x1d8] sm:$0xf0] }
  0xbe   : > { %v1168_v39 = vadd.f32 %v2184_v5, %v1103_v38  ;;  %v1779_v38 = vor.u32 %v1929_v32, %v1776_v33 }
  0xc0   : > { %v1232_v42 = vmax.f32 %v1168_v39, 0.0  ;;  %v855_v43 = vpop.f32.mrf.mxu2 }
  0xc1   : > { %v1025_v44 = vadd.f32 %v2165_v50, %v855_v43  ;;  %v777_v45 = vpop.f32.mrf.mxu0  ;;  %v2230_v54 = vpop.f32.mrf.mxu3  ;;  %v1771_v50 = vor.u32 %v1927_v51, %v1768_v52  ;;  %v1926_v43 = vld [vmem:[%s2059_s28 + $0x1b4] sm:$0xf0] }
  0xc2   : > { %v1296_v47 = vpack.c.bf16 %v1232_v42, %v1232_v42  ;;  %v947_v48 = vadd.f32 %v946_v6, %v777_v45  ;;  %v2225_v49 = vpop.f32.mrf.mxu1  ;;  %v1758_v42 = vld [vmem:[%s2059_s28 + $0x1b0] sm:$0xf] }
  0xc3   : > { %v1135_v53 = vmul.f32 %v2181_v0, %v1025_v44 }
  0xc4   : > { %1361 = vst.msk [vmem:[%s2198_s23 + $0x8] sm:$0xf] %vm1358_vm1, %v1296_v47  ;;  %v1104_v55 = vmul.f32 %v2181_v0, %v947_v48 }
  0xc5   : > { %v1200_v56 = vadd.f32 %v2184_v5, %v1135_v53  ;;  %1847 = vmatmul.msk.bf16.gmra.mxu1 %vm664_vm0, %v1635_v46  ;;  %v1759_v53 = vor.u32 %v1926_v43, %v1758_v42  ;;  %v1899_v42 = vld [vmem:[%s2059_s28 + $0xe4] sm:$0xf]  ;;  %v1656_v43 = vld [vmem:[%s2059_s28 + $0xe8] sm:$0xf0] }
  0xc6   : > { %v1169_v60 = vadd.f32 %v2184_v5, %v1104_v55  ;;  %1864 = vmatmul.msk.bf16.gmra.mxu3 %vm664_vm0, %v1771_v50 }
  0xc7   : > { %v1264_v63 = vmax.f32 %v1200_v56, 0.0 }
  0xc8   : > { %v1233_v1 = vmax.f32 %v1169_v60, 0.0  ;;  %v857_v2 = vpop.f32.mrf.mxu2 }
  0xc9   : > { %v1328_v4 = vpack.c.bf16 %v1264_v63, %v1264_v63  ;;  %v1027_v6 = vadd.f32 %v2171_v57, %v857_v2  ;;  %v780_v8 = vpop.f32.mrf.mxu0  ;;  %v2249_v15 = vpop.f32.mrf.mxu3 }
  0xca   : > { %v1297_v10 = vpack.c.bf16 %v1233_v1, %v1233_v1  ;;  %v950_v11 = vadd.f32 %v949_v18, %v780_v8  ;;  %v2244_v12 = vpop.f32.mrf.mxu1  ;;  %v1895_v18 = vld [vmem:[%s2059_s28 + $0xc4] sm:$0xf]  ;;  %v1651_v8 = vor.u32 %v1897_v61, %v1648_v62 }
  0xcb   : > { %1393 = vst.msk [vmem:[%s2198_s23 + $0x88] sm:$0xf] %vm1358_vm1, %v1328_v4  ;;  %v1136_v14 = vmul.f32 %v2181_v0, %v1027_v6  ;;  %v1643_v27 = vor.u32 %v1895_v18, %v1640_v19 }
  0xcc   : > { %1362 = vst.msk [vmem:[%s2198_s23 + $0xc] sm:$0xf] %vm1358_vm1, %v1297_v10  ;;  %v1105_v16 = vmul.f32 %v2181_v0, %v950_v11  ;;  %819 = vmatmul.bf16.gmra.mxu0 %v1623_v3 }
  0xcd   : > { %v1201_v57 = vadd.f32 %v2184_v5, %v1136_v14  ;;  %899 = vmatmul.bf16.gmra.mxu2 %v1751_v9  ;;  %v1931_v14 = vld [vmem:[%s2059_s28 + $0x1e4] sm:$0xf] }
  0xce   : > { %v1170_v17 = vadd.f32 %v2184_v5, %v1105_v16  ;;  %v1784_v16 = vld [vmem:[%s2059_s28 + $0x1e8] sm:$0xf0] }
  0xcf   : > { %v1265_v20 = vmax.f32 %v1201_v57, 0.0  ;;  %v1787_v18 = vor.u32 %v1931_v14, %v1784_v16 }
  0xd0   : > { %v1234_v22 = vmax.f32 %v1170_v17, 0.0  ;;  %v860_v23 = vpop.f32.mrf.mxu2 }
  0xd1   : > { %v1329_v24 = vpack.c.bf16 %v1265_v20, %v1265_v20  ;;  %v1030_v25 = vadd.f32 %v2186_v7, %v860_v23  ;;  %v782_v26 = vpop.f32.mrf.mxu0  ;;  %v2266_v35 = vpop.f32.mrf.mxu3  ;;  %v1896_v20 = vld [vmem:[%s2059_s28 + $0xc4] sm:$0xf0]  ;;  %v1766_v23 = vld [vmem:[%s2059_s28 + $0x1c0] sm:$0xf] }
  0xd2   : > { %v1298_v28 = vpack.c.bf16 %v1234_v22, %v1234_v22  ;;  %v952_v29 = vadd.f32 %v951_v36, %v782_v26  ;;  %v2259_v31 = vpop.f32.mrf.mxu1  ;;  %v1630_v36 = vld [vmem:[%s2059_s28 + $0xb0] sm:$0xf] }
  0xd3   : > { %1394 = vst.msk [vmem:[%s2198_s23 + $0x8c] sm:$0xf] %vm1358_vm1, %v1329_v24  ;;  %v1137_v34 = vmul.f32 %v2181_v0, %v1030_v25  ;;  %v1631_v47 = vor.u32 %v1894_v40, %v1630_v36  ;;  %v1928_v24 = vld [vmem:[%s2059_s28 + $0x1c4] sm:$0xf0] }
  0xd4   : > { %1363 = vst.msk [vmem:[%s2198_s23 + $0x10] sm:$0xf] %vm1358_vm1, %v1298_v28  ;;  %v1106_v7 = vmul.f32 %v2181_v0, %v952_v29 }
  0xd5   : > { %v1202_v39 = vadd.f32 %v2184_v5, %v1137_v34  ;;  %1848 = vmatmul.msk.bf16.gmra.mxu1 %vm664_vm0, %v1643_v27  ;;  %v1767_v34 = vor.u32 %v1928_v24, %v1766_v23  ;;  %v1901_v23 = vld [vmem:[%s2059_s28 + $0xf4] sm:$0xf] }
  0xd6   : > { %v1171_v41 = vadd.f32 %v2184_v5, %v1106_v7  ;;  %1865 = vmatmul.msk.bf16.gmra.mxu3 %vm664_vm0, %v1779_v38 }
  0xd7   : > { %v1266_v44 = vmax.f32 %v1202_v39, 0.0 }
  0xd8   : > { %v1235_v45 = vmax.f32 %v1171_v41, 0.0  ;;  %v862_v46 = vpop.f32.mrf.mxu2 }
  0xd9   : > { %v1330_v48 = vpack.c.bf16 %v1266_v44, %v1266_v44  ;;  %v1032_v51 = vadd.f32 %v2202_v21, %v862_v46  ;;  %v785_v52 = vpop.f32.mrf.mxu0  ;;  %v2286_v59 = vpop.f32.mrf.mxu3 }
  0xda   : > { %v1299_v55 = vpack.c.bf16 %v1235_v45, %v1235_v45  ;;  %v955_v50 = vadd.f32 %v2225_v49, %v785_v52  ;;  %v2281_v56 = vpop.f32.mrf.mxu1  ;;  %v1659_v52 = vor.u32 %v1899_v42, %v1656_v43  ;;  %v1932_v43 = vld [vmem:[%s2059_s28 + $0x1e4] sm:$0xf0] }
  0xdb   : > { %1395 = vst.msk [vmem:[%s2198_s23 + $0x90] sm:$0xf] %vm1358_vm1, %v1330_v48  ;;  %v1138_v58 = vmul.f32 %v2181_v0, %v1032_v51 }
  0xdc   : > { %1364 = vst.msk [vmem:[%s2198_s23 + $0x14] sm:$0xf] %vm1358_vm1, %v1299_v55  ;;  %v1107_v60 = vmul.f32 %v2181_v0, %v955_v50  ;;  %824 = vmatmul.bf16.gmra.mxu0 %v1631_v47 }
  0xdd   : > { %v1203_v21 = vadd.f32 %v2184_v5, %v1138_v58  ;;  %904 = vmatmul.bf16.gmra.mxu2 %v1759_v53  ;;  %v1933_v58 = vld [vmem:[%s2059_s28 + $0x1f4] sm:$0xf] }
  0xde   : > { %v1172_v49 = vadd.f32 %v2184_v5, %v1107_v60  ;;  %v1792_v60 = vld [vmem:[%s2059_s28 + $0x1f8] sm:$0xf0] }
  0xdf   : > { %v1267_v63 = vmax.f32 %v1203_v21, 0.0  ;;  %v1795_v61 = vor.u32 %v1933_v58, %v1792_v60 }
  0xe0   : > { %v1236_v1 = vmax.f32 %v1172_v49, 0.0  ;;  %v865_v2 = vpop.f32.mrf.mxu2 }
  0xe1   : > { %v1331_v3 = vpack.c.bf16 %v1267_v63, %v1267_v63  ;;  %v1035_v4 = vadd.f32 %v2216_v37, %v865_v2  ;;  %v787_v6 = vpop.f32.mrf.mxu0  ;;  %v2304_v17 = vpop.f32.mrf.mxu3  ;;  %v1898_v63 = vld [vmem:[%s2059_s28 + $0xd4] sm:$0xf0]  ;;  %v1774_v2 = vld [vmem:[%s2059_s28 + $0x1d0] sm:$0xf] }
  0xe2   : > { %v1300_v9 = vpack.c.bf16 %v1236_v1, %v1236_v1  ;;  %v957_v10 = vadd.f32 %v2244_v12, %v787_v6  ;;  %v2297_v11 = vpop.f32.mrf.mxu1  ;;  %v1638_v12 = vld [vmem:[%s2059_s28 + $0xc0] sm:$0xf] }
  0xe3   : > { %1396 = vst.msk [vmem:[%s2198_s23 + $0x94] sm:$0xf] %vm1358_vm1, %v1331_v3  ;;  %v1139_v57 = vmul.f32 %v2181_v0, %v1035_v4  ;;  %v1639_v28 = vor.u32 %v1896_v20, %v1638_v12  ;;  %v1930_v3 = vld [vmem:[%s2059_s28 + $0x1d4] sm:$0xf0] }
  0xe4   : > { %1365 = vst.msk [vmem:[%s2198_s23 + $0x18] sm:$0xf] %vm1358_vm1, %v1300_v9  ;;  %v1108_v37 = vmul.f32 %v2181_v0, %v957_v10 }
  0xe5   : > { %v1204_v19 = vadd.f32 %v2184_v5, %v1139_v57  ;;  %1849 = vmatmul.msk.bf16.gmra.mxu1 %vm664_vm0, %v1651_v8  ;;  %v1775_v57 = vor.u32 %v1930_v3, %v1774_v2 }
  0xe6   : > { %v1173_v22 = vadd.f32 %v2184_v5, %v1108_v37  ;;  %1866 = vmatmul.msk.bf16.gmra.mxu3 %vm664_vm0, %v1787_v18 }
  0xe7   : > { %v1268_v25 = vmax.f32 %v1204_v19, 0.0 }
  0xe8   : > { %v1237_v26 = vmax.f32 %v1173_v22, 0.0  ;;  %v867_v27 = vpop.f32.mrf.mxu2 }
  0xe9   : > { %v1332_v29 = vpack.c.bf16 %v1268_v25, %v1268_v25  ;;  %v1037_v32 = vadd.f32 %v2230_v54, %v867_v27  ;;  %v790_v33 = vpop.f32.mrf.mxu0  ;;  %v2324_v40 = vpop.f32.mrf.mxu3 }
  0xea   : > { %v1301_v7 = vpack.c.bf16 %v1237_v26, %v1237_v26  ;;  %v960_v38 = vadd.f32 %v2259_v31, %v790_v33  ;;  %v2319_v39 = vpop.f32.mrf.mxu1 }
  0xeb   : > { %1397 = vst.msk [vmem:[%s2198_s23 + $0x98] sm:$0xf] %vm1358_vm1, %v1332_v29  ;;  %v1140_v36 = vmul.f32 %v2181_v0, %v1037_v32 }
  0xec   : > { %1366 = vst.msk [vmem:[%s2198_s23 + $0x1c] sm:$0xf] %vm1358_vm1, %v1301_v7  ;;  %v1109_v41 = vmul.f32 %v2181_v0, %v960_v38  ;;  %829 = vmatmul.bf16.gmra.mxu0 %v1639_v28 }
  0xed   : > { %v1205_v54 = vadd.f32 %v2184_v5, %v1140_v36  ;;  %909 = vmatmul.bf16.gmra.mxu2 %v1767_v34 }
  0xee   : > { %v1174_v31 = vadd.f32 %v2184_v5, %v1109_v41 }
  0xef   : > { %v1269_v44 = vmax.f32 %v1205_v54, 0.0 }
  0xf0   : > { %v1238_v45 = vmax.f32 %v1174_v31, 0.0  ;;  %v870_v46 = vpop.f32.mrf.mxu2  ;;  %v1900_v31 = vld [vmem:[%s2059_s28 + $0xe4] sm:$0xf0] }
  0xf1   : > { %v1333_v47 = vpack.c.bf16 %v1269_v44, %v1269_v44  ;;  %v1040_v48 = vadd.f32 %v2249_v15, %v870_v46  ;;  %v792_v51 = vpop.f32.mrf.mxu0  ;;  %v2345_v49 = vpop.f32.mrf.mxu3 }
  0xf2   : > { %v1302_v53 = vpack.c.bf16 %v1238_v45, %v1238_v45  ;;  %v962_v55 = vadd.f32 %v2281_v56, %v792_v51  ;;  %v2335_v50 = vpop.f32.mrf.mxu1  ;;  %v1646_v56 = vld [vmem:[%s2059_s28 + $0xd0] sm:$0xf] }
  0xf3   : > { %1398 = vst.msk [vmem:[%s2198_s23 + $0x9c] sm:$0xf] %vm1358_vm1, %v1333_v47  ;;  %v1141_v21 = vmul.f32 %v2181_v0, %v1040_v48  ;;  %v1647_v9 = vor.u32 %v1898_v63, %v1646_v56  ;;  %v1903_v56 = vld [vmem:[%s2059_s28 + $0x104] sm:$0xf]  ;;  %v1672_v63 = vld [vmem:[%s2059_s28 + $0x108] sm:$0xf0] }
  0xf4   : > { %1367 = vst.msk [vmem:[%s2198_s23 + $0x20] sm:$0xf] %vm1358_vm1, %v1302_v53  ;;  %v1110_v15 = vmul.f32 %v2181_v0, %v962_v55 }
  0xf5   : > { %v1206_v62 = vadd.f32 %v2184_v5, %v1141_v21  ;;  %1850 = vmatmul.msk.bf16.gmra.mxu1 %vm664_vm0, %v1659_v52 }
  0xf6   : > { %v1175_v1 = vadd.f32 %v2184_v5, %v1110_v15  ;;  %1867 = vmatmul.msk.bf16.gmra.mxu3 %vm664_vm0, %v1795_v61 }
  0xf7   : > { %v1270_v4 = vmax.f32 %v1206_v62, 0.0 }
  0xf8   : > { %v1239_v6 = vmax.f32 %v1175_v1, 0.0  ;;  %v872_v8 = vpop.f32.mrf.mxu2 }
  0xf9   : > { %v1334_v10 = vpack.c.bf16 %v1270_v4, %v1270_v4  ;;  %v1042_v14 = vadd.f32 %v2266_v35, %v872_v8  ;;  %v795_v16 = vpop.f32.mrf.mxu0  ;;  %v2369_v24 = vpop.f32.mrf.mxu3  ;;  %v1675_v8 = vor.u32 %v1903_v56, %v1672_v63 }
  0xfa   : > { %v1303_v37 = vpack.c.bf16 %v1239_v6, %v1239_v6  ;;  %v965_v18 = vadd.f32 %v2297_v11, %v795_v16  ;;  %v2357_v19 = vpop.f32.mrf.mxu1  ;;  %v1664_v11 = vld [vmem:[%s2059_s28 + $0xf8] sm:$0xf0] }
  0xfb   : > { %1399 = vst.msk [vmem:[%s2198_s23 + $0xa0] sm:$0xf] %vm1358_vm1, %v1334_v10  ;;  %v1142_v12 = vmul.f32 %v2181_v0, %v1042_v14  ;;  %v1667_v33 = vor.u32 %v1901_v23, %v1664_v11 }
  0xfc   : > { %1368 = vst.msk [vmem:[%s2198_s23 + $0x24] sm:$0xf] %vm1358_vm1, %v1303_v37  ;;  %v1111_v20 = vmul.f32 %v2181_v0, %v965_v18  ;;  %834 = vmatmul.bf16.gmra.mxu0 %v1647_v9  ;;  %v1662_v18 = vld [vmem:[%s2059_s28 + $0xf0] sm:$0xf] }
  0xfd   : > { %v1207_v22 = vadd.f32 %v2184_v5, %v1142_v12  ;;  %914 = vmatmul.bf16.gmra.mxu2 %v1775_v57  ;;  %v1902_v12 = vld [vmem:[%s2059_s28 + $0xf4] sm:$0xf0] }
  0xfe   : > { %v1176_v35 = vadd.f32 %v2184_v5, %v1111_v20  ;;  %v1790_v20 = vld [vmem:[%s2059_s28 + $0x1f0] sm:$0xf] }
  0xff   : > { %v1271_v25 = vmax.f32 %v1207_v22, 0.0  ;;  %v1934_v22 = vld [vmem:[%s2059_s28 + $0x1f4] sm:$0xf0] }
 0x100   : > { %v1240_v26 = vmax.f32 %v1176_v35, 0.0  ;;  %v875_v27 = vpop.f32.mrf.mxu2 }
 0x101   : > { %v1335_v28 = vpack.c.bf16 %v1271_v25, %v1271_v25  ;;  %v1045_v29 = vadd.f32 %v2286_v59, %v875_v27  ;;  %v797_v32 = vpop.f32.mrf.mxu0  ;;  %v1654_v59 = vld [vmem:[%s2059_s28 + $0xe0] sm:$0xf]  ;;  %v2388_v48 = vpop.f32.mrf.mxu3  ;;  %v1663_v25 = vor.u32 %v1902_v12, %v1662_v18 }
 0x102   : > { %v1304_v34 = vpack.c.bf16 %v1240_v26, %v1240_v26  ;;  %v967_v7 = vadd.f32 %v2319_v39, %v797_v32  ;;  %v2373_v38 = vpop.f32.mrf.mxu1  ;;  %v1782_v39 = vld [vmem:[%s2059_s28 + $0x1e0] sm:$0xf]  ;;  %v1655_v47 = vor.u32 %v1900_v31, %v1654_v59 }
 0x103   : > { %1400 = vst.msk [vmem:[%s2198_s23 + $0xa4] sm:$0xf] %vm1358_vm1, %v1335_v28  ;;  %v1143_v36 = vmul.f32 %v2181_v0, %v1045_v29  ;;  %v1783_v55 = vor.u32 %v1932_v43, %v1782_v39  ;;  %v1791_v29 = vor.u32 %v1934_v22, %v1790_v20 }
 0x104   : > { %1369 = vst.msk [vmem:[%s2198_s23 + $0x28] sm:$0xf] %vm1358_vm1, %v1304_v34  ;;  %v1112_v41 = vmul.f32 %v2181_v0, %v967_v7 }
 0x105   : > { %v1208_v54 = vadd.f32 %v2184_v5, %v1143_v36  ;;  %1851 = vmatmul.msk.bf16.gmra.mxu1 %vm664_vm0, %v1667_v33 }
 0x106   : > { %v1177_v42 = vadd.f32 %v2184_v5, %v1112_v41 }
 0x107   : > { %v1272_v44 = vmax.f32 %v1208_v54, 0.0 }
 0x108   : > { %v1241_v45 = vmax.f32 %v1177_v42, 0.0  ;;  %v877_v46 = vpop.f32.mrf.mxu2 }
 0x109   : > { %v1336_v51 = vpack.c.bf16 %v1272_v44, %v1272_v44  ;;  %v1047_v52 = vadd.f32 %v2304_v17, %v877_v46  ;;  %v800_v53 = vpop.f32.mrf.mxu0  ;;  %v2404_v16 = vpop.f32.mrf.mxu3 }
 0x10a   : > { %v1305_v58 = vpack.c.bf16 %v1241_v45, %v1241_v45  ;;  %v970_v60 = vadd.f32 %v2335_v50, %v800_v53  ;;  %v976_v21 = vpop.f32.mrf.mxu1 }
 0x10b   : > { %1401 = vst.msk [vmem:[%s2198_s23 + $0xa8] sm:$0xf] %vm1358_vm1, %v1336_v51  ;;  %v1144_v15 = vmul.f32 %v2181_v0, %v1047_v52 }
 0x10c   : > { %1370 = vst.msk [vmem:[%s2198_s23 + $0x2c] sm:$0xf] %vm1358_vm1, %v1305_v58  ;;  %v1113_v61 = vmul.f32 %v2181_v0, %v970_v60  ;;  %839 = vmatmul.bf16.gmra.mxu0 %v1655_v47 }
 0x10d   : > { %v1209_v62 = vadd.f32 %v2184_v5, %v1144_v15  ;;  %919 = vmatmul.bf16.gmra.mxu2 %v1783_v55 }
 0x10e   : > { %v1178_v17 = vadd.f32 %v2184_v5, %v1113_v61 }
 0x10f   : > { %v1273_v50 = vmax.f32 %v1209_v62, 0.0 }
 0x110   : > { %v1242_v1 = vmax.f32 %v1178_v17, 0.0  ;;  %v880_v2 = vpop.f32.mrf.mxu2 }
 0x111   : > { %v1337_v3 = vpack.c.bf16 %v1273_v50, %v1273_v50  ;;  %v1050_v4 = vadd.f32 %v2324_v40, %v880_v2  ;;  %v802_v6 = vpop.f32.mrf.mxu0  ;;  %v1061_v41 = vpop.f32.mrf.mxu3 }
 0x112   : > { %v1306_v9 = vpack.c.bf16 %v1242_v1, %v1242_v1  ;;  %v972_v10 = vadd.f32 %v2357_v19, %v802_v6  ;;  %v979_v14 = vpop.f32.mrf.mxu1 }
 0x113   : > { %1402 = vst.msk [vmem:[%s2198_s23 + $0xac] sm:$0xf] %vm1358_vm1, %v1337_v3  ;;  %v1145_v57 = vmul.f32 %v2181_v0, %v1050_v4 }
 0x114   : > { %1371 = vst.msk [vmem:[%s2198_s23 + $0x30] sm:$0xf] %vm1358_vm1, %v1306_v9  ;;  %v1114_v37 = vmul.f32 %v2181_v0, %v972_v10 }
 0x115   : > { %v1210_v40 = vadd.f32 %v2184_v5, %v1145_v57  ;;  %1852 = vmatmul.msk.bf16.gmra.mxu1 %vm664_vm0, %v1675_v8 }
 0x116   : > { %v1179_v19 = vadd.f32 %v2184_v5, %v1114_v37 }
 0x117   : > { %v1274_v35 = vmax.f32 %v1210_v40, 0.0 }
 0x118   : > { %v1243_v23 = vmax.f32 %v1179_v19, 0.0  ;;  %v882_v11 = vpop.f32.mrf.mxu2 }
 0x119   : > { %v1338_v26 = vpack.c.bf16 %v1274_v35, %v1274_v35  ;;  %v1052_v27 = vadd.f32 %v2345_v49, %v882_v11  ;;  %v805_v28 = vpop.f32.mrf.mxu0  ;;  %v1064_v55 = vpop.f32.mrf.mxu3 }
 0x11a   : > { %v1307_v32 = vpack.c.bf16 %v1243_v23, %v1243_v23  ;;  %v975_v33 = vadd.f32 %v2373_v38, %v805_v28  ;;  %v981_v34 = vpop.f32.mrf.mxu1 }
 0x11b   : > { %1403 = vst.msk [vmem:[%s2198_s23 + $0xb0] sm:$0xf] %vm1358_vm1, %v1338_v26  ;;  %v1146_v7 = vmul.f32 %v2181_v0, %v1052_v27 }
 0x11c   : > { %1372 = vst.msk [vmem:[%s2198_s23 + $0x34] sm:$0xf] %vm1358_vm1, %v1307_v32  ;;  %v1115_v36 = vmul.f32 %v2181_v0, %v975_v33  ;;  %844 = vmatmul.bf16.gmra.mxu0 %v1663_v25 }
 0x11d   : > { %v1211_v49 = vadd.f32 %v2184_v5, %v1146_v7  ;;  %924 = vmatmul.bf16.gmra.mxu2 %v1791_v29 }
 0x11e   : > { %v1180_v54 = vadd.f32 %v2184_v5, %v1115_v36 }
 0x11f   : > { %v1275_v59 = vmax.f32 %v1211_v49, 0.0 }
 0x120   : > { %v1244_v38 = vmax.f32 %v1180_v54, 0.0  ;;  %v885_v31 = vpop.f32.mrf.mxu2 }
 0x121   : > { %v1339_v42 = vpack.c.bf16 %v1275_v59, %v1275_v59  ;;  %v1055_v39 = vadd.f32 %v2369_v24, %v885_v31  ;;  %v807_v43 = vpop.f32.mrf.mxu0  ;;  %v1066_v6 = vpop.f32.mrf.mxu3 }
 0x122   : > { %v1308_v44 = vpack.c.bf16 %v1244_v38, %v1244_v38  ;;  %v977_v45 = vadd.f32 %v976_v21, %v807_v43  ;;  %v984_v46 = vpop.f32.mrf.mxu1 }
 0x123   : > { %1404 = vst.msk [vmem:[%s2198_s23 + $0xb4] sm:$0xf] %vm1358_vm1, %v1339_v42  ;;  %v1147_v47 = vmul.f32 %v2181_v0, %v1055_v39 }
 0x124   : > { %1373 = vst.msk [vmem:[%s2198_s23 + $0x38] sm:$0xf] %vm1358_vm1, %v1308_v44  ;;  %v1116_v51 = vmul.f32 %v2181_v0, %v977_v45 }
 0x125   : > { %v1212_v52 = vadd.f32 %v2184_v5, %v1147_v47 }
 0x126   : > { %v1181_v53 = vadd.f32 %v2184_v5, %v1116_v51 }
 0x127   : > { %v1276_v24 = vmax.f32 %v1212_v52, 0.0 }
 0x128   : > { %v1245_v58 = vmax.f32 %v1181_v53, 0.0  ;;  %v887_v60 = vpop.f32.mrf.mxu2 }
 0x129   : > { %v1340_v21 = vpack.c.bf16 %v1276_v24, %v1276_v24  ;;  %v1057_v15 = vadd.f32 %v2388_v48, %v887_v60  ;;  %v810_v61 = vpop.f32.mrf.mxu0  ;;  %v1069_v28 = vpop.f32.mrf.mxu3 }
 0x12a   : > { %v1309_v62 = vpack.c.bf16 %v1245_v58, %v1245_v58  ;;  %v980_v17 = vadd.f32 %v979_v14, %v810_v61  ;;  %v986_v56 = vpop.f32.mrf.mxu1 }
 0x12b   : > { %1405 = vst.msk [vmem:[%s2198_s23 + $0xb8] sm:$0xf] %vm1358_vm1, %v1340_v21  ;;  %v1148_v63 = vmul.f32 %v2181_v0, %v1057_v15 }
 0x12c   : > { %1374 = vst.msk [vmem:[%s2198_s23 + $0x3c] sm:$0xf] %vm1358_vm1, %v1309_v62  ;;  %v1117_v50 = vmul.f32 %v2181_v0, %v980_v17 }
 0x12d   : > { %v1213_v1 = vadd.f32 %v2184_v5, %v1148_v63 }
 0x12e   : > { %v1182_v2 = vadd.f32 %v2184_v5, %v1117_v50 }
 0x12f   : > { %v1277_v3 = vmax.f32 %v1213_v1, 0.0 }
 0x130   : > { %v1246_v48 = vmax.f32 %v1182_v2, 0.0  ;;  %v890_v4 = vpop.f32.mrf.mxu2 }
 0x131   : > { %v1341_v8 = vpack.c.bf16 %v1277_v3, %v1277_v3  ;;  %v1060_v9 = vadd.f32 %v2404_v16, %v890_v4  ;;  %v812_v10 = vpop.f32.mrf.mxu0  ;;  %v1071_v44 = vpop.f32.mrf.mxu3 }
 0x132   : > { %v1310_v14 = vpack.c.bf16 %v1246_v48, %v1246_v48  ;;  %v982_v57 = vadd.f32 %v981_v34, %v812_v10  ;;  %v989_v37 = vpop.f32.mrf.mxu1 }
 0x133   : > { %1406 = vst.msk [vmem:[%s2198_s23 + $0xbc] sm:$0xf] %vm1358_vm1, %v1341_v8  ;;  %v1149_v40 = vmul.f32 %v2181_v0, %v1060_v9 }
 0x134   : > { %1375 = vst.msk [vmem:[%s2198_s23 + $0x40] sm:$0xf] %vm1358_vm1, %v1310_v14  ;;  %v1118_v18 = vmul.f32 %v2181_v0, %v982_v57 }
 0x135   : > { %v1214_v12 = vadd.f32 %v2184_v5, %v1149_v40 }
 0x136   : > { %v1183_v19 = vadd.f32 %v2184_v5, %v1118_v18 }
 0x137   : > { %v1278_v20 = vmax.f32 %v1214_v12, 0.0 }
 0x138   : > { %v1247_v16 = vmax.f32 %v1183_v19, 0.0  ;;  %v892_v22 = vpop.f32.mrf.mxu2 }
 0x139   : > { %v1342_v35 = vpack.c.bf16 %v1278_v20, %v1278_v20  ;;  %v1062_v23 = vadd.f32 %v1061_v41, %v892_v22  ;;  %v815_v11 = vpop.f32.mrf.mxu0 }
 0x13a   : > { %v1311_v25 = vpack.c.bf16 %v1247_v16, %v1247_v16  ;;  %v985_v26 = vadd.f32 %v984_v46, %v815_v11  ;;  %v991_v27 = vpop.f32.mrf.mxu1 }
 0x13b   : > { %1407 = vst.msk [vmem:[%s2198_s23 + $0xc0] sm:$0xf] %vm1358_vm1, %v1342_v35  ;;  %v1150_v29 = vmul.f32 %v2181_v0, %v1062_v23 }
 0x13c   : > { %1376 = vst.msk [vmem:[%s2198_s23 + $0x44] sm:$0xf] %vm1358_vm1, %v1311_v25  ;;  %v1119_v32 = vmul.f32 %v2181_v0, %v985_v26 }
 0x13d   : > { %v1215_v33 = vadd.f32 %v2184_v5, %v1150_v29 }
 0x13e   : > { %v1184_v34 = vadd.f32 %v2184_v5, %v1119_v32 }
 0x13f   : > { %v1279_v7 = vmax.f32 %v1215_v33, 0.0 }
 0x140   : > { %v1248_v36 = vmax.f32 %v1184_v34, 0.0  ;;  %v895_v41 = vpop.f32.mrf.mxu2 }
 0x141   : > { %v1343_v49 = vpack.c.bf16 %v1279_v7, %v1279_v7  ;;  %v1065_v54 = vadd.f32 %v1064_v55, %v895_v41  ;;  %v817_v59 = vpop.f32.mrf.mxu0 }
 0x142   : > { %v1312_v38 = vpack.c.bf16 %v1248_v36, %v1248_v36  ;;  %v987_v31 = vadd.f32 %v986_v56, %v817_v59  ;;  %v994_v42 = vpop.f32.mrf.mxu1  ;;  %v1074_v56 = vpop.f32.mrf.mxu3 }
 0x143   : > { %1408 = vst.msk [vmem:[%s2198_s23 + $0xc4] sm:$0xf] %vm1358_vm1, %v1343_v49  ;;  %v1151_v39 = vmul.f32 %v2181_v0, %v1065_v54 }
 0x144   : > { %1377 = vst.msk [vmem:[%s2198_s23 + $0x48] sm:$0xf] %vm1358_vm1, %v1312_v38  ;;  %v1120_v43 = vmul.f32 %v2181_v0, %v987_v31 }
 0x145   : > { %v1216_v45 = vadd.f32 %v2184_v5, %v1151_v39 }
 0x146   : > { %v1185_v46 = vadd.f32 %v2184_v5, %v1120_v43 }
 0x147   : > { %v1280_v47 = vmax.f32 %v1216_v45, 0.0 }
 0x148   : > { %v1249_v51 = vmax.f32 %v1185_v46, 0.0  ;;  %v897_v52 = vpop.f32.mrf.mxu2 }
 0x149   : > { %v1344_v53 = vpack.c.bf16 %v1280_v47, %v1280_v47  ;;  %v1067_v55 = vadd.f32 %v1066_v6, %v897_v52  ;;  %v820_v24 = vpop.f32.mrf.mxu0 }
 0x14a   : > { %v1313_v58 = vpack.c.bf16 %v1249_v51, %v1249_v51  ;;  %v990_v60 = vadd.f32 %v989_v37, %v820_v24  ;;  %v996_v21 = vpop.f32.mrf.mxu1  ;;  %v1076_v12 = vpop.f32.mrf.mxu3 }
 0x14b   : > { %1409 = vst.msk [vmem:[%s2198_s23 + $0xc8] sm:$0xf] %vm1358_vm1, %v1344_v53  ;;  %v1152_v15 = vmul.f32 %v2181_v0, %v1067_v55 }
 0x14c   : > { %1378 = vst.msk [vmem:[%s2198_s23 + $0x4c] sm:$0xf] %vm1358_vm1, %v1313_v58  ;;  %v1121_v61 = vmul.f32 %v2181_v0, %v990_v60 }
 0x14d   : > { %v1217_v62 = vadd.f32 %v2184_v5, %v1152_v15 }
 0x14e   : > { %v1186_v17 = vadd.f32 %v2184_v5, %v1121_v61 }
 0x14f   : > { %v1281_v63 = vmax.f32 %v1217_v62, 0.0 }
 0x150   : > { %v1250_v50 = vmax.f32 %v1186_v17, 0.0  ;;  %v900_v1 = vpop.f32.mrf.mxu2 }
 0x151   : > { %v1345_v2 = vpack.c.bf16 %v1281_v63, %v1281_v63  ;;  %v1070_v3 = vadd.f32 %v1069_v28, %v900_v1  ;;  %v822_v48 = vpop.f32.mrf.mxu0 }
 0x152   : > { %v1314_v4 = vpack.c.bf16 %v1250_v50, %v1250_v50  ;;  %v992_v6 = vadd.f32 %v991_v27, %v822_v48  ;;  %v999_v8 = vpop.f32.mrf.mxu1  ;;  %v1079_v54 = vpop.f32.mrf.mxu3 }
 0x153   : > { %1410 = vst.msk [vmem:[%s2198_s23 + $0xcc] sm:$0xf] %vm1358_vm1, %v1345_v2  ;;  %v1153_v9 = vmul.f32 %v2181_v0, %v1070_v3 }
 0x154   : > { %1379 = vst.msk [vmem:[%s2198_s23 + $0x50] sm:$0xf] %vm1358_vm1, %v1314_v4  ;;  %v1122_v10 = vmul.f32 %v2181_v0, %v992_v6 }
 0x155   : > { %v1218_v14 = vadd.f32 %v2184_v5, %v1153_v9 }
 0x156   : > { %v1187_v57 = vadd.f32 %v2184_v5, %v1122_v10 }
 0x157   : > { %v1282_v37 = vmax.f32 %v1218_v14, 0.0 }
 0x158   : > { %v1251_v40 = vmax.f32 %v1187_v57, 0.0  ;;  %v902_v18 = vpop.f32.mrf.mxu2 }
 0x159   : > { %v1346_v19 = vpack.c.bf16 %v1282_v37, %v1282_v37  ;;  %v1072_v20 = vadd.f32 %v1071_v44, %v902_v18  ;;  %v825_v16 = vpop.f32.mrf.mxu0 }
 0x15a   : > { %v1315_v22 = vpack.c.bf16 %v1251_v40, %v1251_v40  ;;  %v995_v35 = vadd.f32 %v994_v42, %v825_v16  ;;  %v1001_v23 = vpop.f32.mrf.mxu1  ;;  %v1081_v58 = vpop.f32.mrf.mxu3 }
 0x15b   : > { %1411 = vst.msk [vmem:[%s2198_s23 + $0xd0] sm:$0xf] %vm1358_vm1, %v1346_v19  ;;  %v1154_v11 = vmul.f32 %v2181_v0, %v1072_v20 }
 0x15c   : > { %1380 = vst.msk [vmem:[%s2198_s23 + $0x54] sm:$0xf] %vm1358_vm1, %v1315_v22  ;;  %v1123_v25 = vmul.f32 %v2181_v0, %v995_v35 }
 0x15d   : > { %v1219_v26 = vadd.f32 %v2184_v5, %v1154_v11 }
 0x15e   : > { %v1188_v27 = vadd.f32 %v2184_v5, %v1123_v25 }
 0x15f   : > { %v1283_v28 = vmax.f32 %v1219_v26, 0.0 }
 0x160   : > { %v1252_v29 = vmax.f32 %v1188_v27, 0.0  ;;  %v905_v32 = vpop.f32.mrf.mxu2 }
 0x161   : > { %v1347_v33 = vpack.c.bf16 %v1283_v28, %v1283_v28  ;;  %v1075_v34 = vadd.f32 %v1074_v56, %v905_v32  ;;  %v827_v7 = vpop.f32.mrf.mxu0 }
 0x162   : > { %v1316_v36 = vpack.c.bf16 %v1252_v29, %v1252_v29  ;;  %v997_v41 = vadd.f32 %v996_v21, %v827_v7  ;;  %v1004_v49 = vpop.f32.mrf.mxu1 }
 0x163   : > { %1412 = vst.msk [vmem:[%s2198_s23 + $0xd4] sm:$0xf] %vm1358_vm1, %v1347_v33  ;;  %v1155_v59 = vmul.f32 %v2181_v0, %v1075_v34 }
 0x164   : > { %1381 = vst.msk [vmem:[%s2198_s23 + $0x58] sm:$0xf] %vm1358_vm1, %v1316_v36  ;;  %v1124_v38 = vmul.f32 %v2181_v0, %v997_v41 }
 0x165   : > { %v1220_v31 = vadd.f32 %v2184_v5, %v1155_v59 }
 0x166   : > { %v1189_v42 = vadd.f32 %v2184_v5, %v1124_v38 }
 0x167   : > { %v1284_v39 = vmax.f32 %v1220_v31, 0.0 }
 0x168   : > { %v1253_v43 = vmax.f32 %v1189_v42, 0.0  ;;  %v907_v44 = vpop.f32.mrf.mxu2 }
 0x169   : > { %v1348_v45 = vpack.c.bf16 %v1284_v39, %v1284_v39  ;;  %v1077_v46 = vadd.f32 %v1076_v12, %v907_v44  ;;  %v830_v47 = vpop.f32.mrf.mxu0 }
 0x16a   : > { %v1317_v51 = vpack.c.bf16 %v1253_v43, %v1253_v43  ;;  %v1000_v52 = vadd.f32 %v999_v8, %v830_v47  ;;  %v1006_v53 = vpop.f32.mrf.mxu1  ;;  %v1084_v8 = vpop.f32.mrf.mxu3 }
 0x16b   : > { %1413 = vst.msk [vmem:[%s2198_s23 + $0xd8] sm:$0xf] %vm1358_vm1, %v1348_v45  ;;  %v1156_v55 = vmul.f32 %v2181_v0, %v1077_v46 }
 0x16c   : > { %1382 = vst.msk [vmem:[%s2198_s23 + $0x5c] sm:$0xf] %vm1358_vm1, %v1317_v51  ;;  %v1125_v24 = vmul.f32 %v2181_v0, %v1000_v52 }
 0x16d   : > { %v1221_v60 = vadd.f32 %v2184_v5, %v1156_v55 }
 0x16e   : > { %v1190_v21 = vadd.f32 %v2184_v5, %v1125_v24 }
 0x16f   : > { %v1285_v15 = vmax.f32 %v1221_v60, 0.0 }
 0x170   : > { %v1254_v61 = vmax.f32 %v1190_v21, 0.0  ;;  %v910_v62 = vpop.f32.mrf.mxu2 }
 0x171   : > { %v1349_v17 = vpack.c.bf16 %v1285_v15, %v1285_v15  ;;  %v1080_v56 = vadd.f32 %v1079_v54, %v910_v62  ;;  %v832_v63 = vpop.f32.mrf.mxu0 }
 0x172   : > { %v1318_v50 = vpack.c.bf16 %v1254_v61, %v1254_v61  ;;  %v1002_v1 = vadd.f32 %v1001_v23, %v832_v63  ;;  %v1009_v2 = vpop.f32.mrf.mxu1  ;;  %v1086_v26 = vpop.f32.mrf.mxu3 }
 0x173   : > { %1414 = vst.msk [vmem:[%s2198_s23 + $0xdc] sm:$0xf] %vm1358_vm1, %v1349_v17  ;;  %v1157_v3 = vmul.f32 %v2181_v0, %v1080_v56 }
 0x174   : > { %1383 = vst.msk [vmem:[%s2198_s23 + $0x60] sm:$0xf] %vm1358_vm1, %v1318_v50  ;;  %v1126_v48 = vmul.f32 %v2181_v0, %v1002_v1 }
 0x175   : > { %v1222_v4 = vadd.f32 %v2184_v5, %v1157_v3 }
 0x176   : > { %v1191_v6 = vadd.f32 %v2184_v5, %v1126_v48 }
 0x177   : > { %v1286_v9 = vmax.f32 %v1222_v4, 0.0 }
 0x178   : > { %v1255_v10 = vmax.f32 %v1191_v6, 0.0  ;;  %v912_v14 = vpop.f32.mrf.mxu2 }
 0x179   : > { %v1350_v57 = vpack.c.bf16 %v1286_v9, %v1286_v9  ;;  %v1082_v37 = vadd.f32 %v1081_v58, %v912_v14  ;;  %v835_v40 = vpop.f32.mrf.mxu0 }
 0x17a   : > { %v1319_v18 = vpack.c.bf16 %v1255_v10, %v1255_v10  ;;  %v1005_v12 = vadd.f32 %v1004_v49, %v835_v40  ;;  %v1011_v19 = vpop.f32.mrf.mxu1  ;;  %v1089_v44 = vpop.f32.mrf.mxu3 }
 0x17b   : > { %1415 = vst.msk [vmem:[%s2198_s23 + $0xe0] sm:$0xf] %vm1358_vm1, %v1350_v57  ;;  %v1158_v20 = vmul.f32 %v2181_v0, %v1082_v37 }
 0x17c   : > { %1384 = vst.msk [vmem:[%s2198_s23 + $0x64] sm:$0xf] %vm1358_vm1, %v1319_v18  ;;  %v1127_v16 = vmul.f32 %v2181_v0, %v1005_v12 }
 0x17d   : > { %v1223_v22 = vadd.f32 %v2184_v5, %v1158_v20 }
 0x17e   : > { %v1192_v35 = vadd.f32 %v2184_v5, %v1127_v16 }
 0x17f   : > { %v1287_v23 = vmax.f32 %v1223_v22, 0.0 }
 0x180   : > { %v1256_v11 = vmax.f32 %v1192_v35, 0.0  ;;  %v915_v25 = vpop.f32.mrf.mxu2 }
 0x181   : > { %v1351_v27 = vpack.c.bf16 %v1287_v23, %v1287_v23  ;;  %v1085_v28 = vadd.f32 %v1084_v8, %v915_v25  ;;  %v837_v29 = vpop.f32.mrf.mxu0 }
 0x182   : > { %v1320_v32 = vpack.c.bf16 %v1256_v11, %v1256_v11  ;;  %v1007_v33 = vadd.f32 %v1006_v53, %v837_v29  ;;  %v1014_v34 = vpop.f32.mrf.mxu1  ;;  %v1091_v50 = vpop.f32.mrf.mxu3 }
 0x183   : > { %1416 = vst.msk [vmem:[%s2198_s23 + $0xe4] sm:$0xf] %vm1358_vm1, %v1351_v27  ;;  %v1159_v7 = vmul.f32 %v2181_v0, %v1085_v28 }
 0x184   : > { %1385 = vst.msk [vmem:[%s2198_s23 + $0x68] sm:$0xf] %vm1358_vm1, %v1320_v32  ;;  %v1128_v36 = vmul.f32 %v2181_v0, %v1007_v33 }
 0x185   : > { %v1224_v41 = vadd.f32 %v2184_v5, %v1159_v7 }
 0x186   : > { %v1193_v49 = vadd.f32 %v2184_v5, %v1128_v36 }
 0x187   : > { %v1288_v54 = vmax.f32 %v1224_v41, 0.0 }
 0x188   : > { %v1257_v59 = vmax.f32 %v1193_v49, 0.0  ;;  %v917_v38 = vpop.f32.mrf.mxu2 }
 0x189   : > { %v1352_v31 = vpack.c.bf16 %v1288_v54, %v1288_v54  ;;  %v1087_v42 = vadd.f32 %v1086_v26, %v917_v38  ;;  %v840_v39 = vpop.f32.mrf.mxu0 }
 0x18a   : > { %v1321_v43 = vpack.c.bf16 %v1257_v59, %v1257_v59  ;;  %v1010_v45 = vadd.f32 %v1009_v2, %v840_v39  ;;  %v1016_v46 = vpop.f32.mrf.mxu1  ;;  %v1094_v23 = vpop.f32.mrf.mxu3 }
 0x18b   : > { %1417 = vst.msk [vmem:[%s2198_s23 + $0xe8] sm:$0xf] %vm1358_vm1, %v1352_v31  ;;  %v1160_v47 = vmul.f32 %v2181_v0, %v1087_v42 }
 0x18c   : > { %1386 = vst.msk [vmem:[%s2198_s23 + $0x6c] sm:$0xf] %vm1358_vm1, %v1321_v43  ;;  %v1129_v51 = vmul.f32 %v2181_v0, %v1010_v45 }
 0x18d   : > { %v1225_v52 = vadd.f32 %v2184_v5, %v1160_v47 }
 0x18e   : > { %v1194_v53 = vadd.f32 %v2184_v5, %v1129_v51 }
 0x18f   : > { %v1289_v55 = vmax.f32 %v1225_v52, 0.0 }
 0x190   : > { %v1258_v24 = vmax.f32 %v1194_v53, 0.0  ;;  %v920_v58 = vpop.f32.mrf.mxu2 }
 0x191   : > { %v1353_v60 = vpack.c.bf16 %v1289_v55, %v1289_v55  ;;  %v1090_v21 = vadd.f32 %v1089_v44, %v920_v58  ;;  %v842_v15 = vpop.f32.mrf.mxu0 }
 0x192   : > { %v1322_v61 = vpack.c.bf16 %v1258_v24, %v1258_v24  ;;  %v1012_v62 = vadd.f32 %v1011_v19, %v842_v15  ;;  %v1019_v17 = vpop.f32.mrf.mxu1  ;;  %v1096_v31 = vpop.f32.mrf.mxu3 }
 0x193   : > { %1418 = vst.msk [vmem:[%s2198_s23 + $0xec] sm:$0xf] %vm1358_vm1, %v1353_v60  ;;  %v1161_v56 = vmul.f32 %v2181_v0, %v1090_v21  ;;  %v1020_v63 = vadd.f32 %v1019_v17, %v2193_v13 }
 0x194   : > { %1387 = vst.msk [vmem:[%s2198_s23 + $0x70] sm:$0xf] %vm1358_vm1, %v1322_v61  ;;  %v1130_v1 = vmul.f32 %v2181_v0, %v1012_v62 }
 0x195   : > { %v1226_v2 = vadd.f32 %v2184_v5, %v1161_v56  ;;  %v1133_v3 = vmul.f32 %v2181_v0, %v1020_v63 }
 0x196   : > { %v1195_v48 = vadd.f32 %v2184_v5, %v1130_v1 }
 0x197   : > { %v1290_v4 = vmax.f32 %v1226_v2, 0.0  ;;  %v1198_v6 = vadd.f32 %v2184_v5, %v1133_v3 }
 0x198   : > { %v1259_v8 = vmax.f32 %v1195_v48, 0.0  ;;  %v922_v9 = vpop.f32.mrf.mxu2 }
 0x199   : > { %v1354_v13 = vpack.c.bf16 %v1290_v4, %v1290_v4  ;;  %v1262_v10 = vmax.f32 %v1198_v6, 0.0  ;;  %v1092_v14 = vadd.f32 %v1091_v50, %v922_v9  ;;  %v845_v57 = vpop.f32.mrf.mxu0 }
 0x19a   : > { %v1323_v37 = vpack.c.bf16 %v1259_v8, %v1259_v8  ;;  %v1015_v40 = vadd.f32 %v1014_v34, %v845_v57  ;;  %v1021_v18 = vpop.f32.mrf.mxu1 }
 0x19b   : > { %1419 = vst.msk [vmem:[%s2198_s23 + $0xf0] sm:$0xf] %vm1358_vm1, %v1354_v13  ;;  %v1326_v12 = vpack.c.bf16 %v1262_v10, %v1262_v10  ;;  %v1162_v19 = vmul.f32 %v2181_v0, %v1092_v14  ;;  %v1022_v20 = vadd.f32 %v1021_v18, %v2213_v30 }
 0x19c   : > { %1388 = vst.msk [vmem:[%s2198_s23 + $0x74] sm:$0xf] %vm1358_vm1, %v1323_v37  ;;  %v1131_v16 = vmul.f32 %v2181_v0, %v1015_v40 }
 0x19d   : > { %1391 = vst.msk [vmem:[%s2198_s23 + $0x80] sm:$0xf] %vm1358_vm1, %v1326_v12  ;;  %v1227_v22 = vadd.f32 %v2184_v5, %v1162_v19  ;;  %v1134_v35 = vmul.f32 %v2181_v0, %v1022_v20 }
 0x19e   : > { %v1196_v11 = vadd.f32 %v2184_v5, %v1131_v16 }
 0x19f   : > { %v1291_v25 = vmax.f32 %v1227_v22, 0.0  ;;  %v1199_v26 = vadd.f32 %v2184_v5, %v1134_v35 }
 0x1a0   : > { %v1260_v30 = vmax.f32 %v1196_v11, 0.0  ;;  %v925_v27 = vpop.f32.mrf.mxu2 }
 0x1a1   : > { %v1355_v28 = vpack.c.bf16 %v1291_v25, %v1291_v25  ;;  %v1263_v29 = vmax.f32 %v1199_v26, 0.0  ;;  %v1095_v32 = vadd.f32 %v1094_v23, %v925_v27  ;;  %v847_v33 = vpop.f32.mrf.mxu0 }
 0x1a2   : > { %v1324_v34 = vpack.c.bf16 %v1260_v30, %v1260_v30  ;;  %v1017_v7 = vadd.f32 %v1016_v46, %v847_v33 }
 0x1a3   : > { %1420 = vst.msk [vmem:[%s2198_s23 + $0xf4] sm:$0xf] %vm1358_vm1, %v1355_v28  ;;  %v1327_v36 = vpack.c.bf16 %v1263_v29, %v1263_v29  ;;  %v1163_v41 = vmul.f32 %v2181_v0, %v1095_v32 }
 0x1a4   : > { %1389 = vst.msk [vmem:[%s2198_s23 + $0x78] sm:$0xf] %vm1358_vm1, %v1324_v34  ;;  %v1132_v49 = vmul.f32 %v2181_v0, %v1017_v7 }
 0x1a5   : > { %1392 = vst.msk [vmem:[%s2198_s23 + $0x84] sm:$0xf] %vm1358_vm1, %v1327_v36  ;;  %v1228_v54 = vadd.f32 %v2184_v5, %v1163_v41 }
 0x1a6   : > { %v1197_v59 = vadd.f32 %v2184_v5, %v1132_v49 }
 0x1a7   : > { %v1292_v38 = vmax.f32 %v1228_v54, 0.0 }
 0x1a8   : > { %v1261_v42 = vmax.f32 %v1197_v59, 0.0  ;;  %v927_v39 = vpop.f32.mrf.mxu2 }
 0x1a9   : > { %v1356_v43 = vpack.c.bf16 %v1292_v38, %v1292_v38  ;;  %v1097_v44 = vadd.f32 %v1096_v31, %v927_v39 }
 0x1aa   : > { %v1325_v45 = vpack.c.bf16 %v1261_v42, %v1261_v42 }
 0x1ab   : > { %1421 = vst.msk [vmem:[%s2198_s23 + $0xf8] sm:$0xf] %vm1358_vm1, %v1356_v43  ;;  %v1164_v46 = vmul.f32 %v2181_v0, %v1097_v44 }
 0x1ac   : > { %1390 = vst.msk [vmem:[%s2198_s23 + $0x7c] sm:$0xf] %vm1358_vm1, %v1325_v45 }
 0x1ad   : > { %v1229_v47 = vadd.f32 %v2184_v5, %v1164_v46 }
 0x1af   : > { %v1293_v51 = vmax.f32 %v1229_v47, 0.0 }
 0x1b1   : > { %v1357_v52 = vpack.c.bf16 %v1293_v51, %v1293_v51 }
 0x1b3   : > { %1422 = vst.msk [vmem:[%s2198_s23 + $0xfc] sm:$0xf] %vm1358_vm1, %v1357_v52 }
 0x1b4 PF: > { %s13_s14 = sadd.s32 1, %s2001_s14   ;;  %s2599_s12 = smov %s1997_s13 }
 0x1b5   : > { %p10_p5 = scmp.ge.s32.totalorder %s13_s14, 6   ;;  %s2600_s13 = smov %s2602_s15 }
 0x1b7   :  { %12 = sbr.rel (!%p10_p5) target bundleno = 2 (0x2), region = 68 }

</bundles_post_ra>
